<compile_context>
chip_gen: v7x
topology: tpu7x:2x2x1
jax: 0.10.0
libtpu: 0.0.40
codegen_flags: <defaults>
</compile_context>

<pallas_src>
import jax
import jax.numpy as jnp
from jax.experimental import pallas as pl
from jax.experimental.pallas import tpu as pltpu


def _smooth_loss_kernel(x_ref, out_ref):
    """x_ref: (TB, D, H, W) volumes.  out_ref: (1, 8, 128) per-block partial tile."""
    x = x_ref[...].astype(jnp.float32)

    # Forward differences along the three spatial axes.
    # D is a leading (untiled) dim -> slicing is tile-aligned and cheap.
    dy = x[:, 1:, :, :] - x[:, :-1, :, :]   # along D
    dx = x[:, :, 1:, :] - x[:, :, :-1, :]   # along H (sublanes)
    dz = x[:, :, :, 1:] - x[:, :, :, :-1]   # along W (lanes)

    # abs() then square == square, so abs is dropped.
    partial = jnp.sum(dy * dy) + jnp.sum(dx * dx) + jnp.sum(dz * dz)

    # Write the scalar partial into position [0, 0, 0] of a full, unmasked,
    # lane-dense (8, 128) output tile (zeros elsewhere).  The wrapper sums the
    # whole output, so sum(out) == sum of per-block partials exactly.
    r = jax.lax.broadcasted_iota(jnp.int32, out_ref.shape, 1)
    c = jax.lax.broadcasted_iota(jnp.int32, out_ref.shape, 2)
    partial_b = jnp.full(out_ref.shape, partial, dtype=jnp.float32)
    out_ref[...] = jnp.where((r == 0) & (c == 0), partial_b, 0.0)


def _pick_tb(B, vol_bytes, budget_bytes):
    """Largest divisor of B whose block (TB volumes) stays under budget_bytes."""
    max_tb = max(1, budget_bytes // max(vol_bytes, 1))
    tb = 1
    for cand in range(1, B + 1):
        if B % cand == 0 and cand <= max_tb:
            tb = cand
    return tb


def smooth_loss(output, *, block_bytes=2 * 1024 * 1024):
    """output: (N, C, D, H, W) float array -> scalar f32 loss."""
    N, C, D, H, W = output.shape
    B = N * C
    x = output.reshape(B, D, H, W)

    vol_bytes = D * H * W * jnp.dtype(output.dtype).itemsize
    tb = _pick_tb(B, vol_bytes, block_bytes)
    G = B // tb

    partials = pl.pallas_call(
        _smooth_loss_kernel,
        out_shape=jax.ShapeDtypeStruct((G, 8, 128), jnp.float32),
        grid_spec=pltpu.PrefetchScalarGridSpec(
            num_scalar_prefetch=0,
            grid=(G,),
            in_specs=[
                # Full (D, H, W) per volume; only the volume axis is blocked,
                # so the trailing dims always equal the full array dims.
                pl.BlockSpec((tb, D, H, W), lambda b: (b, 0, 0, 0)),
            ],
            out_specs=pl.BlockSpec((1, 8, 128), lambda b: (b, 0, 0)),
        ),
        compiler_params=pltpu.CompilerParams(
            # Independent per-block partials -> safe to shard across TCs.
            dimension_semantics=("parallel",),
            # Explicit budget: safe on v5e (16 MiB scoped default) and within
            # v7x's 64 MiB physical VMEM with the ~2 MiB double-buffered
            # blocks plus diff temporaries.
            vmem_limit_bytes=32 * 1024 * 1024,
        ),
    )(x)

    total_elems = N * C * D * H * W
    total = jnp.sum(partials)  # tree-structured final reduction in XLA
    return (total / jnp.float32(total_elems)) / jnp.float32(3.0)


def _reference(output):
    """Pure-JAX reference mirroring the PyTorch forward exactly."""
    o = output.astype(jnp.float32)
    dy = jnp.abs(o[:, :, 1:, :, :] - o[:, :, :-1, :, :])
    dx = jnp.abs(o[:, :, :, 1:, :] - o[:, :, :, :-1, :])
    dz = jnp.abs(o[:, :, :, :, 1:] - o[:, :, :, :, :-1])
    N, C, D, H, W = o.shape
    dy = jnp.concatenate([dy, jnp.zeros((N, C, 1, H, W), jnp.float32)], axis=2)
    dx = jnp.concatenate([dx, jnp.zeros((N, C, D, 1, W), jnp.float32)], axis=3)
    dz = jnp.concatenate([dz, jnp.zeros((N, C, D, H, 1), jnp.float32)], axis=4)
    return (jnp.mean(dx * dx) + jnp.mean(dy * dy) + jnp.mean(dz * dz)) / 3.0


if __name__ == "__main__":
    # SmoothLoss has no parameters; build a deterministic 5-D DVF input.
    key = jax.random.PRNGKey(0)
    N, C, D, H, W = 2, 3, 4, 8, 16   # (batch, dvf-channels, depth, height, width)
    x = jax.random.normal(key, (N, C, D, H, W), dtype=jnp.float32)

    # Default blocking (all volumes fit in a single block -> grid=(1,)).
    loss = jax.block_until_ready(smooth_loss(x))
    ref = jax.block_until_ready(_reference(x))
    assert jnp.allclose(loss, ref, rtol=1e-5, atol=1e-6), (loss, ref)

    # Force multi-block path (one volume per grid step) to exercise the
    # per-block partial outputs and the "parallel" grid axis.
    loss_mb = jax.block_until_ready(
        smooth_loss(x, block_bytes=D * H * W * 4))
    assert jnp.allclose(loss_mb, ref, rtol=1e-5, atol=1e-6), (loss_mb, ref)

    print("KERNEL_OK")
</pallas_src>

<mosaic_0001>
module attributes {stable_mosaic.version = 11 : i64} {
  func.func @_smooth_loss_kernel(%arg0: i32, %arg1: memref<6x4x8x16xf32, #tpu.memory_space<vmem>>, %arg2: memref<1x8x128xf32, #tpu.memory_space<vmem>>) attributes {dimension_semantics = [#tpu.dimension_semantics<parallel>], iteration_bounds = array<i64: 1>, scalar_prefetch = 0 : i64, scratch_operands = 0 : i64, tpu.core_type = #tpu.core_type<tc>, window_params = [{transform_indices = @transform_0, window_bounds = array<i64: 6, 4, 8, 16>}, {transform_indices = @transform_1, window_bounds = array<i64: 1, 8, 128>}]} {
    %c0 = arith.constant 0 : index
    %c0_0 = arith.constant 0 : index
    %c0_1 = arith.constant 0 : index
    %c0_2 = arith.constant 0 : index
    %0 = vector.load %arg1[%c0, %c0_0, %c0_1, %c0_2] : memref<6x4x8x16xf32, #tpu.memory_space<vmem>>, vector<6x4x8x16xf32>
    %1 = vector.extract_strided_slice %0 {offsets = [0, 1, 0, 0], sizes = [6, 3, 8, 16], strides = [1, 1, 1, 1]} : vector<6x4x8x16xf32> to vector<6x3x8x16xf32>
    %2 = vector.extract_strided_slice %0 {offsets = [0, 0, 0, 0], sizes = [6, 3, 8, 16], strides = [1, 1, 1, 1]} : vector<6x4x8x16xf32> to vector<6x3x8x16xf32>
    %3 = arith.subf %1, %2 : vector<6x3x8x16xf32>
    %4 = vector.extract_strided_slice %0 {offsets = [0, 0, 1, 0], sizes = [6, 4, 7, 16], strides = [1, 1, 1, 1]} : vector<6x4x8x16xf32> to vector<6x4x7x16xf32>
    %5 = vector.extract_strided_slice %0 {offsets = [0, 0, 0, 0], sizes = [6, 4, 7, 16], strides = [1, 1, 1, 1]} : vector<6x4x8x16xf32> to vector<6x4x7x16xf32>
    %6 = arith.subf %4, %5 : vector<6x4x7x16xf32>
    %7 = vector.extract_strided_slice %0 {offsets = [0, 0, 0, 1], sizes = [6, 4, 8, 15], strides = [1, 1, 1, 1]} : vector<6x4x8x16xf32> to vector<6x4x8x15xf32>
    %8 = vector.extract_strided_slice %0 {offsets = [0, 0, 0, 0], sizes = [6, 4, 8, 15], strides = [1, 1, 1, 1]} : vector<6x4x8x16xf32> to vector<6x4x8x15xf32>
    %9 = arith.subf %7, %8 : vector<6x4x8x15xf32>
    %10 = arith.mulf %3, %3 : vector<6x3x8x16xf32>
    %11 = vector.shape_cast %10 : vector<6x3x8x16xf32> to vector<1x6x3x8x16xf32>
    %cst = arith.constant dense<0.000000e+00> : vector<1xf32>
    %12 = vector.multi_reduction <add>, %11, %cst [1, 2, 3, 4] : vector<1x6x3x8x16xf32> to vector<1xf32>
    %13 = vector.shape_cast %12 : vector<1xf32> to vector<1x1x1x1x1xf32>
    %14 = vector.extract %13[0, 0, 0, 0, 0] : f32 from vector<1x1x1x1x1xf32>
    %15 = arith.mulf %6, %6 : vector<6x4x7x16xf32>
    %16 = vector.shape_cast %15 : vector<6x4x7x16xf32> to vector<1x6x4x7x16xf32>
    %cst_3 = arith.constant dense<0.000000e+00> : vector<1xf32>
    %17 = vector.multi_reduction <add>, %16, %cst_3 [1, 2, 3, 4] : vector<1x6x4x7x16xf32> to vector<1xf32>
    %18 = vector.shape_cast %17 : vector<1xf32> to vector<1x1x1x1x1xf32>
    %19 = vector.extract %18[0, 0, 0, 0, 0] : f32 from vector<1x1x1x1x1xf32>
    %20 = arith.addf %14, %19 : f32
    %21 = arith.mulf %9, %9 : vector<6x4x8x15xf32>
    %22 = vector.shape_cast %21 : vector<6x4x8x15xf32> to vector<1x6x4x8x15xf32>
    %cst_4 = arith.constant dense<0.000000e+00> : vector<1xf32>
    %23 = vector.multi_reduction <add>, %22, %cst_4 [1, 2, 3, 4] : vector<1x6x4x8x15xf32> to vector<1xf32>
    %24 = vector.shape_cast %23 : vector<1xf32> to vector<1x1x1x1x1xf32>
    %25 = vector.extract %24[0, 0, 0, 0, 0] : f32 from vector<1x1x1x1x1xf32>
    %26 = arith.addf %20, %25 : f32
    %27 = tpu.iota {dimensions = array<i32: 1>} : vector<1x8x128xi32>
    %28 = tpu.iota {dimensions = array<i32: 2>} : vector<1x8x128xi32>
    %29 = vector.broadcast %26 : f32 to vector<1x8x128xf32>
    %c0_i32 = arith.constant 0 : i32
    %30 = vector.broadcast %c0_i32 : i32 to vector<1x8x128xi32>
    %31 = arith.cmpi eq, %27, %30 : vector<1x8x128xi32>
    %c0_i32_5 = arith.constant 0 : i32
    %32 = vector.broadcast %c0_i32_5 : i32 to vector<1x8x128xi32>
    %33 = arith.cmpi eq, %28, %32 : vector<1x8x128xi32>
    %34 = arith.andi %31, %33 : vector<1x8x128xi1>
    %cst_6 = arith.constant 0.000000e+00 : f32
    %35 = vector.broadcast %cst_6 : f32 to vector<1x8x128xf32>
    %36 = arith.select %34, %29, %35 : vector<1x8x128xi1>, vector<1x8x128xf32>
    %c0_7 = arith.constant 0 : index
    %c0_8 = arith.constant 0 : index
    %c0_9 = arith.constant 0 : index
    %37 = vector.load %arg2[%c0_7, %c0_8, %c0_9] : memref<1x8x128xf32, #tpu.memory_space<vmem>>, vector<1x8x128xf32>
    tpu.vector_store %arg2[%c0_7, %c0_8, %c0_9], %36 {strides = array<i32>} : memref<1x8x128xf32, #tpu.memory_space<vmem>>, vector<1x8x128xf32>,
    return
  }
  func.func @transform_0(%arg0: i32) -> (i32, i32, i32, i32) {
    %c0_i32 = arith.constant 0 : i32
    %c0_i32_0 = arith.constant 0 : i32
    %c0_i32_1 = arith.constant 0 : i32
    %c0_i32_2 = arith.constant 0 : i32
    return %arg0, %c0_i32, %c0_i32_0, %c0_i32_1 : i32, i32, i32, i32
  }
  func.func @transform_1(%arg0: i32) -> (i32, i32, i32) {
    %c0_i32 = arith.constant 0 : i32
    %c0_i32_0 = arith.constant 0 : i32
    %c0_i32_1 = arith.constant 0 : i32
    return %arg0, %c0_i32, %c0_i32_0 : i32, i32, i32
  }
}

</mosaic_0001>

<bundles_post_ra>
// kernel: tpu_custom_call.1
= control target key start
LH: loop header
LB: loop body
LE: loop exit
PB: predicated region body
PF: predicated region fallthrough
CT: control target
= control target key end

     0   :  { %6 = vsyncpa [#allocation3], 0  ;;  %s1071_s0 = inlined_call_operand.hbm [shape: f32[6,4,8,16], index: 0, kind: input, shape index: {}]   ;;  %s1072_s1 = inlined_call_operand.hbm [shape: f32[1,8,128], index: 1, kind: output, shape index: {}]  }
   0x1   :  { %7 = vsyncpa [#allocation4], 0  ;;  %s737_s6 = smov [#allocation2]   ;;  %s689_s10 = scalar_lea.hbm %s1071_s0, 3072 }
   0x2   :  { %s13_s7 = sshll.u32 %s737_s6, 4  ;;  %p690_p0 = scmp.ne.s32.totalorder %s1071_s0, %s689_s10  ;;  %s14_s7 = int_to_ptr.vmem [resolvable:$true] %s13_s7 }
   0x3   :  { %p693_p1 = scmp.lt.u32.totalorder %s689_s10, %s1071_s0 }
   0x5   :  { %p695_p2 = pnand %p693_p1, %p690_p0 }
   0x7   :  { %698 = shalt.err (!%p695_p2)
}
   0x8   :  { %s699_s15 = scalar_lea.vmem %s14_s7, 3072  ;;  %p704_p4 = scmp.lt.s32.totalorder %s14_s7, %s14_s7 }
   0x9   :  { %p700_p3 = scmp.ne.s32.totalorder %s14_s7, %s699_s15  ;;  %p705_p5 = scmp.lt.s32.totalorder %s699_s15, %s699_s15 }
   0xb   :  { %p706_p6 = por %p705_p5, %p704_p4 }
   0xd   :  { %p707_p7 = pnand %p706_p6, %p700_p3 }
   0xf   :  { %710 = shalt.err (!%p707_p7)
}
  0x10   :  { %s738_s16 = smov 128   ;;  %s739_s17 = smov 8  }
  0x11   :  { %19 = dma.hbm_to_vmem [thread:$0]  %s1071_s0, 3072, %s14_s7, [#allocation3], %s738_s16, %s738_s16, %s739_s17  }
  0x12   :  { %733 = dma.done.wait [#allocation3], 3072  }
  0x13   :  { %734 = vsyncadd [#allocation3], 4294964224  ;;  %v765_v0 = vld [vmem:[#allocation2] sm:$0xff]  ;;  %v767_v1 = vld [vmem:[#allocation2 + $0x10] sm:$0xff]  ;;  %s740_s20 = smov 1   ;;  %vm416_vm0 = vcmask 129024  }
  0x14   :  { %161 = vrot.lane.b32.xlu0 %v765_v0, %s740_s20  ;;  %165 = vrot.lane.b32.xlu1 %v767_v1, %s740_s20  ;;  %v773_v2 = vld [vmem:[#allocation2 + $0x8] sm:$0xff]  ;;  %v775_v3 = vld [vmem:[#allocation2 + $0x18] sm:$0xff]  ;;  %v781_v4 = vld [vmem:[#allocation2 + $0x20] sm:$0xff]  ;;  %v89_v24 = vrot.slane %v765_v0, 7  ;;  %v91_v27 = vrot.slane %v767_v1, 7  ;;  %vm275_vm1 = vcmask 130048  }
  0x15   :  { %v783_v5 = vld [vmem:[#allocation2 + $0x28] sm:$0xff]  ;;  %v789_v6 = vld [vmem:[#allocation2 + $0x30] sm:$0xff]  ;;  %v791_v7 = vld [vmem:[#allocation2 + $0x38] sm:$0xff]  ;;  %v90_v25 = vrot.slane %v773_v2, 7  ;;  %v92_v29 = vrot.slane %v775_v3, 7  ;;  %v93_v34 = vrot.slane %v781_v4, 7  ;;  %v48_v50 = vsub.f32 %v767_v1, %v773_v2 }
  0x16   :  { %v797_v8 = vld [vmem:[#allocation2 + $0x40] sm:$0xff]  ;;  %v799_v9 = vld [vmem:[#allocation2 + $0x48] sm:$0xff]  ;;  %v805_v10 = vld [vmem:[#allocation2 + $0x50] sm:$0xff]  ;;  %v137_v26 = vsub.f32 %v765_v0, %v89_v24  ;;  %v139_v31 = vsub.f32 %v767_v1, %v91_v27  ;;  %v94_v43 = vrot.slane %v783_v5, 7  ;;  %v95_v49 = vrot.slane %v789_v6, 7  ;;  %s741_s0 = smov 127  }
  0x17   :  { %v807_v11 = vld [vmem:[#allocation2 + $0x58] sm:$0xff]  ;;  %v813_v12 = vld [vmem:[#allocation2 + $0x60] sm:$0xff]  ;;  %v815_v13 = vld [vmem:[#allocation2 + $0x68] sm:$0xff]  ;;  %v138_v28 = vsub.f32 %v773_v2, %v90_v25  ;;  %v140_v33 = vsub.f32 %v775_v3, %v92_v29  ;;  %v141_v39 = vsub.f32 %v781_v4, %v93_v34  ;;  %v47_v51 = vsub.f32 %v773_v2, %v765_v0  ;;  %s742_s25 = smov [#allocation5]  }
  0x18   :  { %163 = vrot.lane.b32.xlu0 %v773_v2, %s740_s20  ;;  %167 = vrot.lane.b32.xlu1 %v775_v3, %s740_s20  ;;  %v821_v14 = vld [vmem:[#allocation2 + $0x70] sm:$0xff]  ;;  %v823_v15 = vld [vmem:[#allocation2 + $0x78] sm:$0xff]  ;;  %v829_v16 = vld [vmem:[#allocation2 + $0x80] sm:$0xff]  ;;  %v320_v30 = vmul.f32 %v137_v26, %v137_v26  ;;  %v322_v36 = vmul.f32 %v139_v31, %v139_v31  ;;  %v142_v48 = vsub.f32 %v783_v5, %v94_v43  ;;  %v96_v57 = vrot.slane %v791_v7, 7  ;;  %s668_s26 = sshll.u32 %s742_s25, 4  ;;  %s669_s26 = int_to_ptr.vmem [resolvable:$true] %s668_s26 }
  0x19   :  { %v831_v17 = vld [vmem:[#allocation2 + $0x88] sm:$0xff]  ;;  %v837_v18 = vld [vmem:[#allocation2 + $0x90] sm:$0xff]  ;;  %v839_v19 = vld [vmem:[#allocation2 + $0x98] sm:$0xff]  ;;  %v321_v32 = vmul.f32 %v138_v28, %v138_v28  ;;  %v323_v38 = vmul.f32 %v140_v33, %v140_v33  ;;  %v324_v45 = vmul.f32 %v141_v39, %v141_v39  ;;  %v143_v56 = vsub.f32 %v789_v6, %v95_v49  ;;  %s711_s28 = scalar_lea.vmem %s669_s26, 128  ;;  %p716_p9 = scmp.lt.s32.totalorder %s669_s26, %s669_s26 }
  0x1a   :  { %v845_v20 = vld [vmem:[#allocation2 + $0xa0] sm:$0xff]  ;;  %v847_v21 = vld [vmem:[#allocation2 + $0xa8] sm:$0xff]  ;;  %v853_v22 = vld [vmem:[#allocation2 + $0xb0] sm:$0xff]  ;;  %v368_v35 = vrot.slane %v320_v30, 1  ;;  %v370_v41 = vrot.slane %v322_v36, 1  ;;  %v325_v55 = vmul.f32 %v142_v48, %v142_v48  ;;  %v258_v62 = vmul.f32 %v48_v50, %v48_v50  ;;  %p712_p8 = scmp.ne.s32.totalorder %s669_s26, %s711_s28  ;;  %p717_p10 = scmp.lt.s32.totalorder %s711_s28, %s711_s28 }
  0x1b   :  { %v855_v23 = vld [vmem:[#allocation2 + $0xb8] sm:$0xff]  ;;  %v369_v37 = vrot.slane %v321_v32, 1  ;;  %v371_v46 = vrot.slane %v323_v38, 1  ;;  %v372_v53 = vrot.slane %v324_v45, 1  ;;  %v257_v63 = vmul.f32 %v47_v51, %v47_v51 }
  0x1c   :  { %169 = vrot.lane.b32.xlu0 %v781_v4, %s740_s20  ;;  %171 = vrot.lane.b32.xlu1 %v783_v5, %s740_s20  ;;  %v417_v40 = vsel %vm416_vm0, %v368_v35, 0.0  ;;  %v420_v47 = vsel %vm416_vm0, %v370_v41, 0.0  ;;  %v49_v24 = vsub.f32 %v775_v3, %v767_v1  ;;  %v97_v26 = vrot.slane %v797_v8, 7  ;;  %p718_p11 = por %p717_p10, %p716_p9 }
  0x1d   :  { %v418_v42 = vsel %vm416_vm0, %v369_v37, 0.0  ;;  %v422_v54 = vsel %vm416_vm0, %v371_v46, 0.0  ;;  %v424_v28 = vsel %vm416_vm0, %v372_v53, 0.0  ;;  %v373_v29 = vrot.slane %v325_v55, 1 }
  0x1e   :  { %v419_v44 = vadd.f32 %v418_v42, %v417_v40  ;;  %v326_v30 = vmul.f32 %v143_v56, %v143_v56  ;;  %v144_v31 = vsub.f32 %v791_v7, %v96_v57  ;;  %v276_v35 = vsel %vm275_vm1, %v257_v63, 0.0  ;;  %p719_p12 = pnand %p718_p11, %p712_p8 }
  0x1f   :  { %v259_v36 = vmul.f32 %v49_v24, %v49_v24  ;;  %v277_v37 = vsel %vm275_vm1, %v258_v62, 0.0  ;;  %v50_v39 = vsub.f32 %v783_v5, %v781_v4  ;;  %v145_v40 = vsub.f32 %v797_v8, %v97_v26 }
  0x20   :  { %173 = vrot.lane.b32.xlu0 %v789_v6, %s740_s20  ;;  %175 = vrot.lane.b32.xlu1 %v791_v7, %s740_s20  ;;  %v421_v52 = vadd.f32 %v420_v47, %v419_v44  ;;  %v426_v42 = vsel %vm416_vm0, %v373_v29, 0.0  ;;  %v327_v43 = vmul.f32 %v144_v31, %v144_v31  ;;  %v98_v44 = vrot.slane %v799_v9, 7 }
  0x21   :  { %v278_v49 = vadd.f32 %v277_v37, %v276_v35  ;;  %v279_v50 = vsel %vm275_vm1, %v259_v36, 0.0  ;;  %v51_v51 = vsub.f32 %v789_v6, %v783_v5  ;;  %vm594_vm2 = vcmask 121856  }
  0x22   :  { %v423_v25 = vadd.f32 %v422_v54, %v421_v52  ;;  %v260_v52 = vmul.f32 %v50_v39, %v50_v39  ;;  %v328_v54 = vmul.f32 %v145_v40, %v145_v40  ;;  %v375_v56 = vrot.slane %v327_v43, 1 }
  0x23   :  { %v280_v63 = vadd.f32 %v279_v50, %v278_v49  ;;  %v261_v24 = vmul.f32 %v51_v51, %v51_v51  ;;  %v53_v39 = vsub.f32 %v799_v9, %v797_v8  ;;  %v101_v40 = vrot.slane %v813_v12, 7 }
  0x24   :  { %177 = vrot.lane.b32.xlu0 %v797_v8, %s740_s20  ;;  %179 = vrot.lane.b32.xlu1 %v799_v9, %s740_s20  ;;  %v425_v38 = vadd.f32 %v424_v28, %v423_v25  ;;  %v52_v25 = vsub.f32 %v791_v7, %v789_v6  ;;  %v281_v26 = vsel %vm275_vm1, %v260_v52, 0.0  ;;  %v376_v28 = vrot.slane %v328_v54, 1 }
  0x25   :  { %v283_v36 = vsel %vm275_vm1, %v261_v24, 0.0  ;;  %v282_v37 = vadd.f32 %v281_v26, %v280_v63  ;;  %v54_v50 = vsub.f32 %v805_v10, %v799_v9  ;;  %v263_v52 = vmul.f32 %v53_v39, %v53_v39 }
  0x26   :  { %v427_v53 = vadd.f32 %v426_v42, %v425_v38  ;;  %v432_v42 = vsel %vm416_vm0, %v376_v28, 0.0  ;;  %v55_v63 = vsub.f32 %v807_v11, %v805_v10 }
  0x27   :  { %v284_v49 = vadd.f32 %v283_v36, %v282_v37  ;;  %v287_v24 = vsel %vm275_vm1, %v263_v52, 0.0  ;;  %v104_v36 = vrot.slane %v823_v15, 7  ;;  %v57_v52 = vsub.f32 %v821_v14, %v815_v13 }
  0x28   :  { %181 = vrot.lane.b32.xlu0 %v805_v10, %s740_s20  ;;  %183 = vrot.lane.b32.xlu1 %v807_v11, %s740_s20 }
  0x2c   :  { %185 = vrot.lane.b32.xlu0 %v813_v12, %s740_s20  ;;  %187 = vrot.lane.b32.xlu1 %v815_v13, %s740_s20 }
  0x30   :  { %189 = vrot.lane.b32.xlu0 %v821_v14, %s740_s20  ;;  %191 = vrot.lane.b32.xlu1 %v823_v15, %s740_s20 }
  0x34   :  { %193 = vrot.lane.b32.xlu0 %v829_v16, %s740_s20  ;;  %195 = vrot.lane.b32.xlu1 %v831_v17, %s740_s20 }
  0x38   :  { %197 = vrot.lane.b32.xlu0 %v837_v18, %s740_s20  ;;  %199 = vrot.lane.b32.xlu1 %v839_v19, %s740_s20 }
  0x3c   :  { %201 = vrot.lane.b32.xlu0 %v845_v20, %s740_s20  ;;  %203 = vrot.lane.b32.xlu1 %v847_v21, %s740_s20 }
  0x40   :  { %205 = vrot.lane.b32.xlu0 %v853_v22, %s740_s20  ;;  %207 = vrot.lane.b32.xlu1 %v855_v23, %s740_s20 }
  0x86   :  { %v162_v58 = vpop.permute.xlu0 %161  ;;  %v166_v59 = vpop.permute.xlu1 %165 }
  0x87   :  { %v233_v60 = vsub.f32 %v765_v0, %v162_v58  ;;  %v235_v61 = vsub.f32 %v767_v1, %v166_v59  ;;  %v146_v58 = vsub.f32 %v799_v9, %v98_v44  ;;  %v99_v59 = vrot.slane %v805_v10, 7 }
  0x89   :  { %v474_v27 = vmul.f32 %v233_v60, %v233_v60  ;;  %v476_v33 = vmul.f32 %v235_v61, %v235_v61  ;;  %v329_v31 = vmul.f32 %v146_v58, %v146_v58  ;;  %v102_v58 = vrot.slane %v815_v13, 7 }
  0x8a   :  { %v164_v32 = vpop.permute.xlu0 %163  ;;  %v168_v0 = vpop.permute.xlu1 %167 }
  0x8b   :  { %v234_v34 = vsub.f32 %v773_v2, %v164_v32  ;;  %522 = vrot.lane.b32.xlu0 %v474_v27, %s741_s0  ;;  %v236_v1 = vsub.f32 %v775_v3, %v168_v0  ;;  %v374_v2 = vrot.slane %v326_v30, 1  ;;  %v430_v30 = vsel %vm416_vm0, %v375_v56, 0.0 }
  0x8c   :  { %v147_v32 = vsub.f32 %v805_v10, %v99_v59  ;;  %v100_v0 = vrot.slane %v807_v11, 7 }
  0x8d   :  { %v475_v41 = vmul.f32 %v234_v34, %v234_v34  ;;  %v477_v46 = vmul.f32 %v236_v1, %v236_v1  ;;  %v428_v57 = vsel %vm416_vm0, %v374_v2, 0.0  ;;  %v377_v2 = vrot.slane %v329_v31, 1 }
  0x8e   :  { %v170_v45 = vpop.permute.xlu0 %169  ;;  %v172_v3 = vpop.permute.xlu1 %171  ;;  %v429_v27 = vadd.f32 %v428_v57, %v427_v53  ;;  %v330_v43 = vmul.f32 %v147_v32, %v147_v32  ;;  %v148_v44 = vsub.f32 %v807_v11, %v100_v0  ;;  %v149_v53 = vsub.f32 %v813_v12, %v101_v40 }
  0x8f   :  { %526 = vrot.lane.b32.xlu0 %v476_v33, %s741_s0  ;;  %524 = vrot.lane.b32.xlu1 %v475_v41, %s741_s0  ;;  %v237_v47 = vsub.f32 %v781_v4, %v170_v45  ;;  %v238_v48 = vsub.f32 %v783_v5, %v172_v3  ;;  %v103_v31 = vrot.slane %v821_v14, 7 }
  0x90   :  { %v431_v38 = vadd.f32 %v430_v30, %v429_v27  ;;  %v378_v56 = vrot.slane %v330_v43, 1  ;;  %v331_v57 = vmul.f32 %v148_v44, %v148_v44  ;;  %v332_v26 = vmul.f32 %v149_v53, %v149_v53 }
  0x91   :  { %v478_v55 = vmul.f32 %v237_v47, %v237_v47  ;;  %v479_v61 = vmul.f32 %v238_v48, %v238_v48  ;;  %v150_v30 = vsub.f32 %v815_v13, %v102_v58 }
  0x92   :  { %v174_v4 = vpop.permute.xlu0 %173  ;;  %v176_v60 = vpop.permute.xlu1 %175  ;;  %v433_v51 = vadd.f32 %v432_v42, %v431_v38  ;;  %v379_v28 = vrot.slane %v331_v57, 1  ;;  %v380_v39 = vrot.slane %v332_v26, 1 }
  0x93   :  { %528 = vrot.lane.b32.xlu1 %v477_v46, %s741_s0  ;;  %v239_v62 = vsub.f32 %v789_v6, %v174_v4  ;;  %530 = vrot.lane.b32.xlu0 %v478_v55, %s741_s0  ;;  %v240_v5 = vsub.f32 %v791_v7, %v176_v60  ;;  %v262_v7 = vmul.f32 %v52_v25, %v52_v25  ;;  %v434_v55 = vsel %vm416_vm0, %v377_v2, 0.0 }
  0x94   :  { %v435_v25 = vadd.f32 %v434_v55, %v433_v51  ;;  %v438_v38 = vsel %vm416_vm0, %v379_v28, 0.0  ;;  %v333_v40 = vmul.f32 %v150_v30, %v150_v30 }
  0x95   :  { %v480_v29 = vmul.f32 %v239_v62, %v239_v62  ;;  %v481_v1 = vmul.f32 %v240_v5, %v240_v5  ;;  %v285_v48 = vsel %vm275_vm1, %v262_v7, 0.0  ;;  %v264_v5 = vmul.f32 %v54_v50, %v54_v50 }
  0x96   :  { %v178_v33 = vpop.permute.xlu0 %177  ;;  %v180_v34 = vpop.permute.xlu1 %179  ;;  %v286_v62 = vadd.f32 %v285_v48, %v284_v49  ;;  %v105_v48 = vrot.slane %v829_v16, 7  ;;  %v440_v50 = vsel %vm416_vm0, %v380_v39, 0.0  ;;  %v381_v51 = vrot.slane %v333_v40, 1 }
  0x97   :  { %532 = vrot.lane.b32.xlu1 %v479_v61, %s741_s0  ;;  %v241_v35 = vsub.f32 %v797_v8, %v178_v33  ;;  %534 = vrot.lane.b32.xlu0 %v480_v29, %s741_s0  ;;  %v242_v6 = vsub.f32 %v799_v9, %v180_v34  ;;  %v436_v29 = vsel %vm416_vm0, %v378_v56, 0.0 }
  0x98   :  { %v437_v7 = vadd.f32 %v436_v29, %v435_v25 }
  0x99   :  { %v482_v41 = vmul.f32 %v241_v35, %v241_v35  ;;  %v483_v46 = vmul.f32 %v242_v6, %v242_v6  ;;  %v56_v35 = vsub.f32 %v815_v13, %v813_v12  ;;  %v289_v6 = vsel %vm275_vm1, %v264_v5, 0.0 }
  0x9a   :  { %v182_v45 = vpop.permute.xlu0 %181  ;;  %v184_v3 = vpop.permute.xlu1 %183  ;;  %v267_v5 = vmul.f32 %v57_v52, %v57_v52 }
  0x9b   :  { %536 = vrot.lane.b32.xlu1 %v481_v1, %s741_s0  ;;  %v243_v47 = vsub.f32 %v805_v10, %v182_v45  ;;  %538 = vrot.lane.b32.xlu0 %v482_v41, %s741_s0  ;;  %v244_v8 = vsub.f32 %v807_v11, %v184_v3  ;;  %v265_v11 = vmul.f32 %v55_v63, %v55_v63 }
  0x9c   :  { %v288_v1 = vadd.f32 %v287_v24, %v286_v62  ;;  %v151_v41 = vsub.f32 %v821_v14, %v103_v31  ;;  %v442_v62 = vsel %vm416_vm0, %v381_v51, 0.0  ;;  %v106_v24 = vrot.slane %v831_v17, 7 }
  0x9d   :  { %v484_v54 = vmul.f32 %v243_v47, %v243_v47  ;;  %v485_v60 = vmul.f32 %v244_v8, %v244_v8  ;;  %v291_v45 = vsel %vm275_vm1, %v265_v11, 0.0  ;;  %v439_v47 = vadd.f32 %v438_v38, %v437_v7 }
  0x9e   :  { %v186_v59 = vpop.permute.xlu0 %185  ;;  %v188_v4 = vpop.permute.xlu1 %187  ;;  %v290_v3 = vadd.f32 %v289_v6, %v288_v1  ;;  %v152_v8 = vsub.f32 %v823_v15, %v104_v36  ;;  %v334_v53 = vmul.f32 %v151_v41, %v151_v41  ;;  %v154_v11 = vsub.f32 %v831_v17, %v106_v24 }
  0x9f   :  { %540 = vrot.lane.b32.xlu1 %v483_v46, %s741_s0  ;;  %v245_v61 = vsub.f32 %v813_v12, %v186_v59  ;;  %542 = vrot.lane.b32.xlu0 %v484_v54, %s741_s0  ;;  %v246_v9 = vsub.f32 %v815_v13, %v188_v4  ;;  %v266_v46 = vmul.f32 %v56_v35, %v56_v35  ;;  %v107_v38 = vrot.slane %v837_v18, 7 }
  0xa0   :  { %v292_v59 = vadd.f32 %v291_v45, %v290_v3  ;;  %v58_v4 = vsub.f32 %v823_v15, %v821_v14  ;;  %v153_v13 = vsub.f32 %v829_v16, %v105_v48  ;;  %v382_v63 = vrot.slane %v334_v53, 1 }
  0xa1   :  { %v486_v27 = vmul.f32 %v245_v61, %v245_v61  ;;  %v487_v33 = vmul.f32 %v246_v9, %v246_v9  ;;  %v335_v61 = vmul.f32 %v152_v8, %v152_v8  ;;  %v59_v1 = vsub.f32 %v831_v17, %v829_v16 }
  0xa2   :  { %v190_v32 = vpop.permute.xlu0 %189  ;;  %v192_v0 = vpop.permute.xlu1 %191  ;;  %v268_v29 = vmul.f32 %v58_v4, %v58_v4  ;;  %v108_v3 = vrot.slane %v839_v19, 7  ;;  %v109_v53 = vrot.slane %v845_v20, 7 }
  0xa3   :  { %544 = vrot.lane.b32.xlu1 %v485_v60, %s741_s0  ;;  %v247_v34 = vsub.f32 %v821_v14, %v190_v32  ;;  %546 = vrot.lane.b32.xlu0 %v486_v27, %s741_s0  ;;  %v248_v10 = vsub.f32 %v823_v15, %v192_v0  ;;  %v441_v60 = vadd.f32 %v440_v50, %v439_v47  ;;  %v293_v15 = vsel %vm275_vm1, %v266_v46, 0.0 }
  0xa4   :  { %v383_v30 = vrot.slane %v335_v61, 1  ;;  %v336_v32 = vmul.f32 %v153_v13, %v153_v13  ;;  %v294_v35 = vadd.f32 %v293_v15, %v292_v59  ;;  %v297_v45 = vsel %vm275_vm1, %v268_v29, 0.0 }
  0xa5   :  { %v488_v37 = vmul.f32 %v247_v34, %v247_v34  ;;  %v489_v43 = vmul.f32 %v248_v10, %v248_v10  ;;  %v443_v31 = vadd.f32 %v442_v62, %v441_v60  ;;  %v155_v46 = vsub.f32 %v837_v18, %v107_v38 }
  0xa6   :  { %v194_v42 = vpop.permute.xlu0 %193  ;;  %v196_v2 = vpop.permute.xlu1 %195  ;;  %v446_v41 = vsel %vm416_vm0, %v383_v30, 0.0  ;;  %v61_v50 = vsub.f32 %v839_v19, %v837_v18  ;;  %v156_v52 = vsub.f32 %v839_v19, %v108_v3  ;;  %v157_v61 = vsub.f32 %v845_v20, %v109_v53 }
  0xa7   :  { %548 = vrot.lane.b32.xlu1 %v487_v33, %s741_s0  ;;  %v249_v44 = vsub.f32 %v829_v16, %v194_v42  ;;  %550 = vrot.lane.b32.xlu0 %v488_v37, %s741_s0  ;;  %v250_v12 = vsub.f32 %v831_v17, %v196_v2  ;;  %v444_v33 = vsel %vm416_vm0, %v382_v63, 0.0  ;;  %v295_v37 = vsel %vm275_vm1, %v267_v5, 0.0 }
  0xa8   :  { %v445_v39 = vadd.f32 %v444_v33, %v443_v31  ;;  %v384_v42 = vrot.slane %v336_v32, 1  ;;  %v337_v16 = vmul.f32 %v154_v11, %v154_v11  ;;  %v296_v2 = vadd.f32 %v295_v37, %v294_v35 }
  0xa9   :  { %v490_v49 = vmul.f32 %v249_v44, %v249_v44  ;;  %v491_v56 = vmul.f32 %v250_v12, %v250_v12  ;;  %v60_v44 = vsub.f32 %v837_v18, %v831_v17  ;;  %v269_v12 = vmul.f32 %v59_v1, %v59_v1 }
  0xaa   :  { %v198_v54 = vpop.permute.xlu0 %197  ;;  %v200_v55 = vpop.permute.xlu1 %199  ;;  %v447_v47 = vadd.f32 %v446_v41, %v445_v39  ;;  %v448_v8 = vsel %vm416_vm0, %v384_v42, 0.0  ;;  %v298_v48 = vadd.f32 %v297_v45, %v296_v2  ;;  %v271_v59 = vmul.f32 %v61_v50, %v61_v50 }
  0xab   :  { %552 = vrot.lane.b32.xlu1 %v489_v43, %s741_s0  ;;  %v251_v57 = vsub.f32 %v837_v18, %v198_v54  ;;  %554 = vrot.lane.b32.xlu0 %v490_v49, %s741_s0  ;;  %v252_v58 = vsub.f32 %v839_v19, %v200_v55  ;;  %v385_v49 = vrot.slane %v337_v16, 1  ;;  %v270_v51 = vmul.f32 %v60_v44, %v60_v44 }
  0xac   :  { %v299_v17 = vsel %vm275_vm1, %v269_v12, 0.0  ;;  %v338_v54 = vmul.f32 %v155_v46, %v155_v46  ;;  %v449_v55 = vadd.f32 %v448_v8, %v447_v47  ;;  %v339_v60 = vmul.f32 %v156_v52, %v156_v52 }
  0xad   :  { %v492_v9 = vmul.f32 %v251_v57, %v251_v57  ;;  %v493_v27 = vmul.f32 %v252_v58, %v252_v58  ;;  %v450_v57 = vsel %vm416_vm0, %v385_v49, 0.0  ;;  %v62_v58 = vsub.f32 %v847_v21, %v845_v20 }
  0xae   :  { %v202_v25 = vpop.permute.xlu0 %201  ;;  %v204_v26 = vpop.permute.xlu1 %203  ;;  %v301_v4 = vsel %vm275_vm1, %v270_v51, 0.0  ;;  %v110_v18 = vrot.slane %v847_v21, 7  ;;  %v386_v13 = vrot.slane %v338_v54, 1  ;;  %v451_v19 = vadd.f32 %v450_v57, %v449_v55 }
  0xaf   :  { %556 = vrot.lane.b32.xlu1 %v491_v56, %s741_s0  ;;  %v253_v28 = vsub.f32 %v845_v20, %v202_v25  ;;  %558 = vrot.lane.b32.xlu0 %v492_v9, %s741_s0  ;;  %v254_v14 = vsub.f32 %v847_v21, %v204_v26  ;;  %v300_v56 = vadd.f32 %v299_v17, %v298_v48  ;;  %v111_v62 = vrot.slane %v853_v22, 7 }
  0xb0   :  { %v63_v5 = vsub.f32 %v853_v22, %v847_v21  ;;  %v272_v63 = vmul.f32 %v62_v58, %v62_v58  ;;  %v303_v24 = vsel %vm275_vm1, %v271_v59, 0.0  ;;  %v158_v25 = vsub.f32 %v847_v21, %v110_v18 }
  0xb1   :  { %v494_v0 = vmul.f32 %v253_v28, %v253_v28  ;;  %v495_v6 = vmul.f32 %v254_v14, %v254_v14  ;;  %v302_v9 = vadd.f32 %v301_v4, %v300_v56  ;;  %v340_v26 = vmul.f32 %v157_v61, %v157_v61 }
  0xb2   :  { %v206_v34 = vpop.permute.xlu0 %205  ;;  %v208_v10 = vpop.permute.xlu1 %207  ;;  %v452_v28 = vsel %vm416_vm0, %v386_v13, 0.0  ;;  %v112_v14 = vrot.slane %v855_v23, 7  ;;  %v64_v29 = vsub.f32 %v855_v23, %v853_v22  ;;  %v273_v30 = vmul.f32 %v63_v5, %v63_v5 }
  0xb3   :  { %560 = vrot.lane.b32.xlu1 %v493_v27, %s741_s0  ;;  %v255_v7 = vsub.f32 %v853_v22, %v206_v34  ;;  %562 = vrot.lane.b32.xlu0 %v494_v0, %s741_s0  ;;  %v256_v36 = vsub.f32 %v855_v23, %v208_v10  ;;  %v387_v27 = vrot.slane %v339_v60, 1  ;;  %v304_v20 = vadd.f32 %v303_v24, %v302_v9 }
  0xb4   :  { %v453_v15 = vadd.f32 %v452_v28, %v451_v19  ;;  %v305_v31 = vsel %vm275_vm1, %v272_v63, 0.0  ;;  %v159_v32 = vsub.f32 %v853_v22, %v111_v62  ;;  %v341_v0 = vmul.f32 %v158_v25, %v158_v25 }
  0xb5   :  { %v496_v40 = vmul.f32 %v255_v7, %v255_v7  ;;  %v497_v43 = vmul.f32 %v256_v36, %v256_v36  ;;  %v388_v33 = vrot.slane %v340_v26, 1  ;;  %v454_v21 = vsel %vm416_vm0, %v387_v27, 0.0 }
  0xb6   :  { %v306_v34 = vadd.f32 %v305_v31, %v304_v20  ;;  %v455_v10 = vadd.f32 %v454_v21, %v453_v15  ;;  %v274_v11 = vmul.f32 %v64_v29, %v64_v29  ;;  %v307_v1 = vsel %vm275_vm1, %v273_v30, 0.0 }
  0xb7   :  { %564 = vrot.lane.b32.xlu1 %v495_v6, %s741_s0  ;;  %566 = vrot.lane.b32.xlu0 %v496_v40, %s741_s0  ;;  %v160_v35 = vsub.f32 %v855_v23, %v112_v14  ;;  %v342_v6 = vmul.f32 %v159_v32, %v159_v32  ;;  %v389_v7 = vrot.slane %v341_v0, 1  ;;  %v456_v36 = vsel %vm416_vm0, %v388_v33, 0.0 }
  0xb8   :  { %v308_v37 = vadd.f32 %v307_v1, %v306_v34  ;;  %v457_v38 = vadd.f32 %v456_v36, %v455_v10  ;;  %v309_v39 = vsel %vm275_vm1, %v274_v11, 0.0 }
  0xb9   :  { %v343_v22 = vmul.f32 %v160_v35, %v160_v35  ;;  %v390_v40 = vrot.slane %v342_v6, 1  ;;  %v458_v41 = vsel %vm416_vm0, %v389_v7, 0.0 }
  0xba   :  { %v310_v42 = vadd.f32 %v309_v39, %v308_v37  ;;  %v459_v16 = vadd.f32 %v458_v41, %v457_v38 }
  0xbb   :  { %568 = vrot.lane.b32.xlu1 %v497_v43, %s741_s0  ;;  %v391_v2 = vrot.slane %v343_v22, 1  ;;  %v460_v43 = vsel %vm416_vm0, %v390_v40, 0.0 }
  0xbc   :  { %v461_v44 = vadd.f32 %v460_v43, %v459_v16 }
  0xbd   :  { %v462_v23 = vsel %vm416_vm0, %v391_v2, 0.0 }
  0xbe   :  { %v463_v12 = vadd.f32 %v462_v23, %v461_v44 }
  0xd6   :  { %311 = vadd.xlane.f32.xlu0 %v310_v42 }
  0xdf   :  { %464 = vadd.xlane.f32.xlu1 %v463_v12 }
  0xfd   :  { %v523_v45 = vpop.permute.xlu0 %522 }
  0xfe   :  { %v595_v47 = vsel %vm594_vm2, %v523_v45, 0.0 }
 0x101   :  { %v525_v3 = vpop.permute.xlu1 %524  ;;  %v527_v46 = vpop.permute.xlu0 %526 }
 0x102   :  { %v596_v8 = vsel %vm594_vm2, %v525_v3, 0.0  ;;  %v598_v49 = vsel %vm594_vm2, %v527_v46, 0.0 }
 0x103   :  { %v597_v48 = vadd.f32 %v596_v8, %v595_v47 }
 0x105   :  { %v599_v50 = vadd.f32 %v598_v49, %v597_v48  ;;  %v529_v51 = vpop.permute.xlu1 %528  ;;  %v531_v17 = vpop.permute.xlu0 %530 }
 0x106   :  { %v600_v52 = vsel %vm594_vm2, %v529_v51, 0.0  ;;  %v602_v53 = vsel %vm594_vm2, %v531_v17, 0.0 }
 0x107   :  { %v601_v54 = vadd.f32 %v600_v52, %v599_v50 }
 0x109   :  { %v603_v55 = vadd.f32 %v602_v53, %v601_v54  ;;  %v533_v56 = vpop.permute.xlu1 %532  ;;  %v535_v57 = vpop.permute.xlu0 %534 }
 0x10a   :  { %v604_v58 = vsel %vm594_vm2, %v533_v56, 0.0  ;;  %v606_v59 = vsel %vm594_vm2, %v535_v57, 0.0 }
 0x10b   :  { %v605_v4 = vadd.f32 %v604_v58, %v603_v55 }
 0x10d   :  { %v607_v60 = vadd.f32 %v606_v59, %v605_v4  ;;  %v537_v18 = vpop.permute.xlu1 %536  ;;  %v539_v61 = vpop.permute.xlu0 %538 }
 0x10e   :  { %v608_v13 = vsel %vm594_vm2, %v537_v18, 0.0  ;;  %v610_v19 = vsel %vm594_vm2, %v539_v61, 0.0 }
 0x10f   :  { %v609_v9 = vadd.f32 %v608_v13, %v607_v60 }
 0x111   :  { %v611_v62 = vadd.f32 %v610_v19, %v609_v9  ;;  %v541_v5 = vpop.permute.xlu1 %540  ;;  %v543_v63 = vpop.permute.xlu0 %542 }
 0x112   :  { %v612_v24 = vsel %vm594_vm2, %v541_v5, 0.0  ;;  %v614_v25 = vsel %vm594_vm2, %v543_v63, 0.0 }
 0x113   :  { %v613_v26 = vadd.f32 %v612_v24, %v611_v62  ;;  %v652_v24 = vlaneseq }
 0x115   :  { %v615_v27 = vadd.f32 %v614_v25, %v613_v26  ;;  %v545_v28 = vpop.permute.xlu1 %544  ;;  %v547_v14 = vpop.permute.xlu0 %546  ;;  %v653_v25 = vshrl.u32 %v652_v24, 7  ;;  %v655_v26 = vand.u32 127, %v652_v24 }
 0x116   :  { %v616_v20 = vsel %vm594_vm2, %v545_v28, 0.0  ;;  %v618_v15 = vsel %vm594_vm2, %v547_v14, 0.0 }
 0x117   :  { %v617_v29 = vadd.f32 %v616_v20, %v615_v27  ;;  %vm657_vm3 = vcmp.eq.s32.totalorder %v653_v25, 0  ;;  %vm658_vm4 = vcmp.eq.s32.totalorder %v655_v26, 0 }
 0x118   :  { %vm659_vm5 = vmand %vm657_vm3, %vm658_vm4 }
 0x119   :  { %v619_v30 = vadd.f32 %v618_v15, %v617_v29  ;;  %v549_v31 = vpop.permute.xlu1 %548  ;;  %v551_v32 = vpop.permute.xlu0 %550 }
 0x11a   :  { %v620_v0 = vsel %vm594_vm2, %v549_v31, 0.0  ;;  %v622_v33 = vsel %vm594_vm2, %v551_v32, 0.0 }
 0x11b   :  { %v621_v21 = vadd.f32 %v620_v0, %v619_v30 }
 0x11d   :  { %v623_v34 = vadd.f32 %v622_v33, %v621_v21  ;;  %v553_v10 = vpop.permute.xlu1 %552  ;;  %v555_v11 = vpop.permute.xlu0 %554 }
 0x11e   :  { %v624_v1 = vsel %vm594_vm2, %v553_v10, 0.0  ;;  %v626_v35 = vsel %vm594_vm2, %v555_v11, 0.0 }
 0x11f   :  { %v625_v6 = vadd.f32 %v624_v1, %v623_v34 }
 0x121   :  { %v627_v7 = vadd.f32 %v626_v35, %v625_v6  ;;  %v557_v36 = vpop.permute.xlu1 %556  ;;  %v559_v37 = vpop.permute.xlu0 %558 }
 0x122   :  { %v628_v38 = vsel %vm594_vm2, %v557_v36, 0.0  ;;  %v630_v39 = vsel %vm594_vm2, %v559_v37, 0.0 }
 0x123   :  { %v629_v22 = vadd.f32 %v628_v38, %v627_v7 }
 0x125   :  { %v631_v40 = vadd.f32 %v630_v39, %v629_v22  ;;  %v561_v41 = vpop.permute.xlu1 %560  ;;  %v563_v42 = vpop.permute.xlu0 %562 }
 0x126   :  { %v632_v16 = vsel %vm594_vm2, %v561_v41, 0.0  ;;  %v634_v2 = vsel %vm594_vm2, %v563_v42, 0.0 }
 0x127   :  { %v633_v43 = vadd.f32 %v632_v16, %v631_v40 }
 0x129   :  { %v635_v44 = vadd.f32 %v634_v2, %v633_v43  ;;  %v565_v23 = vpop.permute.xlu1 %564  ;;  %v567_v12 = vpop.permute.xlu0 %566 }
 0x12a   :  { %v636_v45 = vsel %vm594_vm2, %v565_v23, 0.0  ;;  %v638_v3 = vsel %vm594_vm2, %v567_v12, 0.0 }
 0x12b   :  { %v637_v46 = vadd.f32 %v636_v45, %v635_v44 }
 0x12d   :  { %v639_v47 = vadd.f32 %v638_v3, %v637_v46  ;;  %v569_v8 = vpop.permute.xlu1 %568 }
 0x12e   :  { %v640_v48 = vsel %vm594_vm2, %v569_v8, 0.0 }
 0x12f   :  { %v641_v49 = vadd.f32 %v640_v48, %v639_v47 }
 0x131   :  { %642 = vadd.xlane.f32.xlu0 %v641_v49 }
 0x163   :  { %v312_v50 = vpop.xlane.xlu0 %311 }
 0x164   :  { %v313_v51 = vrot.slane %v312_v50, 4 }
 0x166   :  { %v314_v17 = vadd.f32 %v313_v51, %v312_v50 }
 0x168   :  { %v315_v52 = vrot.slane %v314_v17, 2 }
 0x16a   :  { %v316_v53 = vadd.f32 %v315_v52, %v314_v17 }
 0x16c   :  { %v465_v54 = vpop.xlane.xlu1 %464  ;;  %v317_v55 = vrot.slane %v316_v53, 1 }
 0x16d   :  { %v466_v56 = vrot.slane %v465_v54, 4 }
 0x16e   :  { %v318_v57 = vadd.f32 %v317_v55, %v316_v53 }
 0x16f   :  { %v467_v58 = vadd.f32 %v466_v56, %v465_v54 }
 0x170   :  { %677 = vpush %v318_v57 }
 0x171   :  { %v468_v59 = vrot.slane %v467_v58, 2 }
 0x173   :  { %v469_v4 = vadd.f32 %v468_v59, %v467_v58 }
 0x175   :  { %v470_v60 = vrot.slane %v469_v4, 1 }
 0x177   :  { %v471_v18 = vadd.f32 %v470_v60, %v469_v4 }
 0x179   :  { %679 = vpush %v471_v18 }
 0x1a1   :  { %s678_s21 = spop %677 }
 0x1aa   :  { %s680_s22 = spop %679 }
 0x1ab   :  { %s473_s23 = sadd.f32 %s680_s22, %s678_s21 }
 0x1be   :  { %v643_v61 = vpop.xlane.xlu0 %642 }
 0x1bf   :  { %v644_v13 = vrot.slane %v643_v61, 4 }
 0x1c1   :  { %v645_v19 = vadd.f32 %v644_v13, %v643_v61 }
 0x1c3   :  { %v646_v9 = vrot.slane %v645_v19, 2 }
 0x1c5   :  { %v647_v62 = vadd.f32 %v646_v9, %v645_v19 }
 0x1c7   :  { %v648_v5 = vrot.slane %v647_v62, 1 }
 0x1c9   :  { %v649_v63 = vadd.f32 %v648_v5, %v647_v62 }
 0x1cb   :  { %681 = vpush %v649_v63 }
 0x1fc   :  { %s682_s24 = spop %681 }
 0x1fd   :  { %s651_s27 = sadd.f32 %s682_s24, %s473_s23 }
 0x1ff   :  { %v656_v27 = vstv %s651_s27 }
 0x200   :  { %v660_v28 = vsel %vm659_vm5, %v656_v27, 0.0 }
 0x201   :  { %661 = vst [vmem:[#allocation5] sm:$0xff] %v660_v28 }
 0x202   :  { %722 = shalt.err (!%p719_p12)
}
 0x203   :  { %s723_s2 = scalar_lea.hbm %s1072_s1, 128 }
 0x204   :  { %p724_p13 = scmp.ne.s32.totalorder %s1072_s1, %s723_s2  ;;  %p727_p0 = scmp.lt.u32.totalorder %s723_s2, %s1072_s1 }
 0x206   :  { %p729_p1 = pnand %p727_p0, %p724_p13 }
 0x208   :  { %732 = shalt.err (!%p729_p1)
}
 0x209   :  { %671 = dma.vmem_to_hbm [thread:$0]  %s669_s26, 128, %s1072_s1, [#allocation4]  }
 0x20a   :  { %735 = dma.done.wait [#allocation4], 128  }
 0x20b   :  { %736 = vsyncadd [#allocation4], 4294967168 }
 0x20c   :  { %675 = vsyncpa [#allocation3], 1 }
 0x20d   :  { %676 = vsyncpa [#allocation4], 1 }

</bundles_post_ra>
